<compile_context>
chip_gen: v7x
topology: tpu7x:2x2x1
jax: 0.10.0
libtpu: 0.0.40
codegen_flags: <defaults>
</compile_context>

<pallas_src>
import jax
import jax.numpy as jnp
from jax import lax
from jax.experimental import pallas as pl
from jax.experimental.pallas import tpu as pltpu

NUM_RELATIONS = 3
NUM_LAYERS = 4
BN_EPS = 1e-5
CP = 128                          # lane-padded channel width
KP = (NUM_RELATIONS + 1) * CP     # 512: wide-K of the per-layer transform matmul


def _vmem():
    return pl.BlockSpec(memory_space=pltpu.MemorySpace.VMEM)


# --------------------------------------------------------------------------
# Single fused Pallas kernel: 4x (RGCNConv+BN) -> mean pool -> lin1 -> lin2
# --------------------------------------------------------------------------
def fused_rgcn_kernel(a_ref, x_ref, invdeg_ref, p_ref, invcnt_ref, meta_ref,
                      w_all_ref, b_all_ref,
                      w1x_ref, w1m_ref, b1_ref, w2_ref, b2_ref,
                      o_ref, xin_ref, meta_pad_ref):
    n = a_ref.shape[1]             # nodes
    in_ch = x_ref.shape[1]         # raw input channels (unpadded)
    meta_ch = meta_ref.shape[1]    # raw MetaData width (unpadded)

    # ---- init persistent [N, 4*CP] scratch: h slab <- raw x, everything else 0 ----
    xin_ref[...] = jnp.zeros_like(xin_ref)
    xin_ref[:, 0:in_ch] = x_ref[...]

    # ---- 4x (RGCNConv + folded BatchNorm); h stays VMEM-resident in the scratch ---
    def layer(l, carry):
        # all-relation mean aggregation in ONE MXU pass: [R*N, N] @ [N, CP]
        agg = jnp.dot(a_ref[...], xin_ref[:, 0:CP],
                      preferred_element_type=jnp.float32)
        # exact f32 1/deg_r(i) scale (normalisation factored out of A)
        agg = (agg * invdeg_ref[...]).astype(jnp.bfloat16)
        # relation slabs into lanes [CP:4CP) -- static, 128-lane-aligned stores
        xin_ref[:, CP:2 * CP] = agg[0:n]
        xin_ref[:, 2 * CP:3 * CP] = agg[n:2 * n]
        xin_ref[:, 3 * CP:4 * CP] = agg[2 * n:3 * n]
        # wide-K (K=512) transform vs BN-folded [W_root | W_rel0 | W_rel1 | W_rel2]
        out = jnp.dot(xin_ref[...], w_all_ref[l],
                      preferred_element_type=jnp.float32) + b_all_ref[l]
        xin_ref[:, 0:CP] = out.astype(jnp.bfloat16)
        return carry

    lax.fori_loop(0, NUM_LAYERS, layer, 0)

    # ---- head: global_mean_pool -> concat(MetaData) -> lin1 -> (dropout=id) -> lin2
    pooled = jnp.dot(p_ref[...], xin_ref[:, 0:CP],
                     preferred_element_type=jnp.float32)          # [G, CP] (0/1 P)
    pooled = (pooled * invcnt_ref[...]).astype(jnp.bfloat16)      # exact f32 1/|V_g|

    meta_pad_ref[...] = jnp.zeros_like(meta_pad_ref)              # pad MetaData in VMEM
    meta_pad_ref[:, 0:meta_ch] = meta_ref[...]

    # concat([pooled, meta]) @ W1^T == pooled @ W1x + meta @ W1m  (W1 split by rows)
    h1 = (jnp.dot(pooled, w1x_ref[...], preferred_element_type=jnp.float32)
          + jnp.dot(meta_pad_ref[...], w1m_ref[...],
                    preferred_element_type=jnp.float32)
          + b1_ref[...])                                          # [G, CP]
    # F.dropout(p=0.5) in eval mode is the identity.
    out = jnp.dot(h1.astype(jnp.bfloat16), w2_ref[...],
                  preferred_element_type=jnp.float32) + b2_ref[...]
    o_ref[...] = out                                              # [G, CP]; col 0 real


# --------------------------------------------------------------------------
# Glue (index -> dense operators), plain JAX
# --------------------------------------------------------------------------
def build_adjacency(edge_index, edge_type, num_nodes):
    """A[r*N+i, j] = #edges j->i of relation r (unnormalised 0/1/2.. counts);
    inv_deg[r*N+i] = 1/max(deg_r(i),1) applied inside the kernel (mean aggregation)."""
    src, dst = edge_index[0], edge_index[1]
    A = jnp.zeros((NUM_RELATIONS, num_nodes, num_nodes), jnp.float32)
    A = A.at[edge_type, dst, src].add(1.0)
    deg = A.sum(axis=2).reshape(NUM_RELATIONS * num_nodes, 1)
    inv_deg = 1.0 / jnp.where(deg > 0, deg, 1.0)
    return A.reshape(NUM_RELATIONS * num_nodes, num_nodes), inv_deg


def build_mean_pool(batch, num_graphs):
    """P[g, i] = 1 if batch[i]==g else 0; inv_cnt[g] = 1/|V_g| applied in the kernel."""
    one_hot = (batch[None, :] == jnp.arange(num_graphs)[:, None]).astype(jnp.float32)
    cnt = one_hot.sum(axis=1, keepdims=True)
    inv_cnt = 1.0 / jnp.where(cnt > 0, cnt, 1.0)
    return one_hot, inv_cnt


def rgcn_forward(x, edge_attr, edge_index, edge_type, meta, batch,
                 fused_params, num_graphs):
    # edge_attr is unused by the reference forward (kept for signature parity).
    del edge_attr
    n, _ = x.shape
    g = num_graphs
    A, inv_deg = build_adjacency(edge_index, edge_type, n)
    P, inv_cnt = build_mean_pool(batch, g)

    fp = fused_params
    args = (A.astype(jnp.bfloat16), x.astype(jnp.bfloat16), inv_deg,
            P.astype(jnp.bfloat16), inv_cnt, meta.astype(jnp.bfloat16),
            fp["w_all"], fp["b_all"],
            fp["w1x"], fp["w1m"], fp["b1"], fp["w2"], fp["b2"])

    flops = int(NUM_LAYERS * (2 * NUM_RELATIONS * n * n * CP + 2 * n * KP * CP)
                + 2 * g * n * CP + 2 * 2 * g * CP * CP + 2 * g * CP * CP)
    bytes_accessed = int(sum(a.size * a.dtype.itemsize for a in args) + g * CP * 4)

    out_pad = pl.pallas_call(
        fused_rgcn_kernel,
        out_shape=jax.ShapeDtypeStruct((g, CP), jnp.float32),
        in_specs=[_vmem()] * len(args),
        out_specs=_vmem(),
        scratch_shapes=[pltpu.VMEM((n, KP), jnp.bfloat16),   # persistent [h|agg0|agg1|agg2]
                        pltpu.VMEM((g, CP), jnp.bfloat16)],  # lane-padded MetaData
        cost_estimate=pl.CostEstimate(flops=flops, transcendentals=0,
                                      bytes_accessed=bytes_accessed),
        # NOTE: no vmem_limit_bytes -- 64 MiB would be v7x's entire per-TC VMEM.
    )(*args)
    return out_pad[:, :1]                         # un-pad the lane-dense output


# --------------------------------------------------------------------------
# Deterministic synthetic parameters + BN-folding / padding / stacking
# --------------------------------------------------------------------------
def xavier_uniform(key, shape):
    fan_in, fan_out = shape[-2], shape[-1]
    limit = (6.0 / (fan_in + fan_out)) ** 0.5
    return jax.random.uniform(key, shape, jnp.float32, -limit, limit)


def init_raw_params(key, in_ch, hidden):
    dims = [(in_ch, 100), (100, hidden), (hidden, hidden), (hidden, hidden)]
    layers = []
    for ci, co in dims:
        key, k1, k2, k3, k4 = jax.random.split(key, 5)
        layers.append(dict(
            w_rel=xavier_uniform(k1, (NUM_RELATIONS, ci, co)),
            w_root=xavier_uniform(k2, (ci, co)),
            bias=jnp.zeros((1, co), jnp.float32),
            gamma=jax.random.uniform(k3, (1, co), jnp.float32, 0.5, 1.5),
            beta=jax.random.uniform(k4, (1, co), jnp.float32, -0.1, 0.1),
            run_mean=jnp.zeros((1, co), jnp.float32),   # BatchNorm eval running stats
            run_var=jnp.ones((1, co), jnp.float32),
        ))
    key, k1, k2 = jax.random.split(key, 3)
    w1 = xavier_uniform(k1, (hidden + 38, 100))         # lin1: (H+38) -> 100
    head = dict(
        w1x=w1[:hidden], w1m=w1[hidden:],
        b1=jnp.zeros((1, 100), jnp.float32),
        w2=xavier_uniform(k2, (100, 1)),                # lin2: 100 -> 1
        b2=jnp.zeros((1, 1), jnp.float32),
    )
    return dict(layers=layers, head=head)


def fuse_params(raw, hidden):
    """Fold BN(eval) into weights, stack [W_root|W_rel*] along K, zero-pad to CP lanes."""
    w_all, b_all = [], []
    for lyr in raw["layers"]:
        ci, co = lyr["w_root"].shape
        scale = lyr["gamma"] * jax.lax.rsqrt(lyr["run_var"] + BN_EPS)       # [1, co]
        w_stack = jnp.concatenate([lyr["w_root"][None], lyr["w_rel"]], 0)   # [R+1, ci, co]
        w_stack = w_stack * scale[None]
        bias = (lyr["bias"] - lyr["run_mean"]) * scale + lyr["beta"]        # [1, co]
        w_pad = jnp.zeros((NUM_RELATIONS + 1, CP, CP), jnp.float32)
        w_pad = w_pad.at[:, :ci, :co].set(w_stack).reshape(KP, CP)
        b_pad = jnp.zeros((1, CP), jnp.float32).at[:, :co].set(bias)
        w_all.append(w_pad)
        b_all.append(b_pad)
    h = raw["head"]
    return dict(
        w_all=jnp.stack(w_all).astype(jnp.bfloat16),                        # [L, 4*CP, CP]
        b_all=jnp.stack(b_all),                                             # [L, 1, CP] f32
        w1x=jnp.zeros((CP, CP), jnp.float32).at[:hidden, :100].set(h["w1x"]).astype(jnp.bfloat16),
        w1m=jnp.zeros((CP, CP), jnp.float32).at[:38, :100].set(h["w1m"]).astype(jnp.bfloat16),
        b1=jnp.zeros((1, CP), jnp.float32).at[:, :100].set(h["b1"]),
        w2=jnp.zeros((CP, CP), jnp.float32).at[:100, :1].set(h["w2"]).astype(jnp.bfloat16),
        b2=jnp.zeros((1, CP), jnp.float32).at[:, :1].set(h["b2"]),
    )


# --------------------------------------------------------------------------
if __name__ == "__main__":
    key = jax.random.PRNGKey(0)
    N, E, G = 16, 48, 2          # nodes, edges, graphs
    IN_CH, HIDDEN = 8, 32        # input_channels, hidden_channels (graph_pooling='mean')

    k1, k2, k3, k4, k5, k6, kp = jax.random.split(key, 7)
    x = jax.random.normal(k1, (N, IN_CH), jnp.float32)
    edge_index = jax.random.randint(k2, (2, E), 0, N)
    edge_type = jax.random.randint(k3, (E,), 0, NUM_RELATIONS)
    edge_attr = jax.random.normal(k4, (E, 4), jnp.float32)   # unused by forward
    meta = jax.random.normal(k5, (G, 38), jnp.float32)
    batch = jnp.sort(jax.random.randint(k6, (N,), 0, G))

    raw = init_raw_params(kp, IN_CH, HIDDEN)
    fused = fuse_params(raw, HIDDEN)

    out = rgcn_forward(x, edge_attr, edge_index, edge_type, meta, batch, fused, G)
    out = jax.block_until_ready(out)
    assert out.shape == (G, 1) and out.dtype == jnp.float32
    print("KERNEL_OK")
</pallas_src>

<mosaic_0001>
module attributes {stable_mosaic.version = 11 : i64} {
  func.func @fused_rgcn_kernel(%arg0: memref<48x16xbf16, #tpu.memory_space<vmem>>, %arg1: memref<16x8xbf16, #tpu.memory_space<vmem>>, %arg2: memref<48x1xf32, #tpu.memory_space<vmem>>, %arg3: memref<2x16xbf16, #tpu.memory_space<vmem>>, %arg4: memref<2x1xf32, #tpu.memory_space<vmem>>, %arg5: memref<2x38xbf16, #tpu.memory_space<vmem>>, %arg6: memref<4x512x128xbf16, #tpu.memory_space<vmem>>, %arg7: memref<4x1x128xf32, #tpu.memory_space<vmem>>, %arg8: memref<128x128xbf16, #tpu.memory_space<vmem>>, %arg9: memref<128x128xbf16, #tpu.memory_space<vmem>>, %arg10: memref<1x128xf32, #tpu.memory_space<vmem>>, %arg11: memref<128x128xbf16, #tpu.memory_space<vmem>>, %arg12: memref<1x128xf32, #tpu.memory_space<vmem>>, %arg13: memref<2x128xf32, #tpu.memory_space<vmem>>, %arg14: memref<16x512xbf16, #tpu.memory_space<vmem>>, %arg15: memref<2x128xbf16, #tpu.memory_space<vmem>>) attributes {dimension_semantics = [], scalar_prefetch = 0 : i64, scratch_operands = 2 : i64, tpu.core_type = #tpu.core_type<tc>} {
    %cst = arith.constant 0.000000e+00 : bf16
    %0 = vector.broadcast %cst : bf16 to vector<16x512xbf16>
    %c0 = arith.constant 0 : index
    %c0_0 = arith.constant 0 : index
    %1 = vector.load %arg14[%c0, %c0_0] : memref<16x512xbf16, #tpu.memory_space<vmem>>, vector<16x512xbf16>
    tpu.vector_store %arg14[%c0, %c0_0], %0 {strides = array<i32>} : memref<16x512xbf16, #tpu.memory_space<vmem>>, vector<16x512xbf16>,
    %c0_1 = arith.constant 0 : index
    %c0_2 = arith.constant 0 : index
    %2 = vector.load %arg1[%c0_1, %c0_2] : memref<16x8xbf16, #tpu.memory_space<vmem>>, vector<16x8xbf16>
    %c0_3 = arith.constant 0 : index
    %c0_4 = arith.constant 0 : index
    %3 = vector.load %arg14[%c0_3, %c0_4] : memref<16x512xbf16, #tpu.memory_space<vmem>>, vector<16x8xbf16>
    tpu.vector_store %arg14[%c0_3, %c0_4], %2 {strides = array<i32>} : memref<16x512xbf16, #tpu.memory_space<vmem>>, vector<16x8xbf16>,
    %c0_i32 = arith.constant 0 : i32
    %c4_i32 = arith.constant 4 : i32
    %4 = arith.addi %c0_i32, %c4_i32 : i32
    %c1_i32 = arith.constant 1 : i32
    scf.for %arg16 = %c0_i32 to %4 step %c1_i32  : i32 {
      %c0_37 = arith.constant 0 : index
      %c0_38 = arith.constant 0 : index
      %32 = vector.load %arg0[%c0_37, %c0_38] : memref<48x16xbf16, #tpu.memory_space<vmem>>, vector<48x16xbf16>
      %c0_39 = arith.constant 0 : index
      %c0_40 = arith.constant 0 : index
      %33 = vector.load %arg14[%c0_39, %c0_40] : memref<16x512xbf16, #tpu.memory_space<vmem>>, vector<16x128xbf16>
      %cst_41 = arith.constant dense<0.000000e+00> : vector<48x128xf32>
      %34 = tpu.matmul %32, %33, %cst_41 {dimension_numbers = #tpu.dot_dimension_numbers<[1], [0], [0], [1], [0, 0, 1, 1], [], []>} : vector<48x16xbf16>, vector<16x128xbf16>, vector<48x128xf32> -> vector<48x128xf32>
      %c0_42 = arith.constant 0 : index
      %c0_43 = arith.constant 0 : index
      %35 = vector.load %arg2[%c0_42, %c0_43] : memref<48x1xf32, #tpu.memory_space<vmem>>, vector<48x1xf32>
      %36 = vector.broadcast %35 : vector<48x1xf32> to vector<48x128xf32>
      %37 = arith.mulf %34, %36 : vector<48x128xf32>
      %38 = arith.truncf %37 : vector<48x128xf32> to vector<48x128xbf16>
      %39 = vector.extract_strided_slice %38 {offsets = [0, 0], sizes = [16, 128], strides = [1, 1]} : vector<48x128xbf16> to vector<16x128xbf16>
      %c0_44 = arith.constant 0 : index
      %c128 = arith.constant 128 : index
      %40 = vector.load %arg14[%c0_44, %c128] : memref<16x512xbf16, #tpu.memory_space<vmem>>, vector<16x128xbf16>
      tpu.vector_store %arg14[%c0_44, %c128], %39 {strides = array<i32>} : memref<16x512xbf16, #tpu.memory_space<vmem>>, vector<16x128xbf16>,
      %41 = vector.extract_strided_slice %38 {offsets = [16, 0], sizes = [16, 128], strides = [1, 1]} : vector<48x128xbf16> to vector<16x128xbf16>
      %c0_45 = arith.constant 0 : index
      %c256 = arith.constant 256 : index
      %42 = vector.load %arg14[%c0_45, %c256] : memref<16x512xbf16, #tpu.memory_space<vmem>>, vector<16x128xbf16>
      tpu.vector_store %arg14[%c0_45, %c256], %41 {strides = array<i32>} : memref<16x512xbf16, #tpu.memory_space<vmem>>, vector<16x128xbf16>,
      %43 = vector.extract_strided_slice %38 {offsets = [32, 0], sizes = [16, 128], strides = [1, 1]} : vector<48x128xbf16> to vector<16x128xbf16>
      %c0_46 = arith.constant 0 : index
      %c384 = arith.constant 384 : index
      %44 = vector.load %arg14[%c0_46, %c384] : memref<16x512xbf16, #tpu.memory_space<vmem>>, vector<16x128xbf16>
      tpu.vector_store %arg14[%c0_46, %c384], %43 {strides = array<i32>} : memref<16x512xbf16, #tpu.memory_space<vmem>>, vector<16x128xbf16>,
      %c0_47 = arith.constant 0 : index
      %c0_48 = arith.constant 0 : index
      %45 = vector.load %arg14[%c0_47, %c0_48] : memref<16x512xbf16, #tpu.memory_space<vmem>>, vector<16x512xbf16>
      %46 = arith.index_cast %arg16 : i32 to index
      %c0_49 = arith.constant 0 : index
      %c0_50 = arith.constant 0 : index
      %47 = vector.load %arg6[%46, %c0_49, %c0_50] : memref<4x512x128xbf16, #tpu.memory_space<vmem>>, vector<1x512x128xbf16>
      %48 = vector.shape_cast %47 : vector<1x512x128xbf16> to vector<512x128xbf16>
      %cst_51 = arith.constant dense<0.000000e+00> : vector<16x128xf32>
      %49 = tpu.matmul %45, %48, %cst_51 {dimension_numbers = #tpu.dot_dimension_numbers<[1], [0], [0], [1], [0, 0, 1, 1], [], []>} : vector<16x512xbf16>, vector<512x128xbf16>, vector<16x128xf32> -> vector<16x128xf32>
      %50 = arith.index_cast %arg16 : i32 to index
      %c0_52 = arith.constant 0 : index
      %c0_53 = arith.constant 0 : index
      %51 = vector.load %arg7[%50, %c0_52, %c0_53] : memref<4x1x128xf32, #tpu.memory_space<vmem>>, vector<1x1x128xf32>
      %52 = vector.shape_cast %51 : vector<1x1x128xf32> to vector<1x128xf32>
      %53 = vector.broadcast %52 : vector<1x128xf32> to vector<16x128xf32>
      %54 = arith.addf %49, %53 : vector<16x128xf32>
      %55 = arith.truncf %54 : vector<16x128xf32> to vector<16x128xbf16>
      %c0_54 = arith.constant 0 : index
      %c0_55 = arith.constant 0 : index
      %56 = vector.load %arg14[%c0_54, %c0_55] : memref<16x512xbf16, #tpu.memory_space<vmem>>, vector<16x128xbf16>
      tpu.vector_store %arg14[%c0_54, %c0_55], %55 {strides = array<i32>} : memref<16x512xbf16, #tpu.memory_space<vmem>>, vector<16x128xbf16>,
    }
    %c4_i32_5 = arith.constant 4 : i32
    %c0_6 = arith.constant 0 : index
    %c0_7 = arith.constant 0 : index
    %5 = vector.load %arg3[%c0_6, %c0_7] : memref<2x16xbf16, #tpu.memory_space<vmem>>, vector<2x16xbf16>
    %c0_8 = arith.constant 0 : index
    %c0_9 = arith.constant 0 : index
    %6 = vector.load %arg14[%c0_8, %c0_9] : memref<16x512xbf16, #tpu.memory_space<vmem>>, vector<16x128xbf16>
    %cst_10 = arith.constant dense<0.000000e+00> : vector<2x128xf32>
    %7 = tpu.matmul %5, %6, %cst_10 {dimension_numbers = #tpu.dot_dimension_numbers<[1], [0], [0], [1], [0, 0, 1, 1], [], []>} : vector<2x16xbf16>, vector<16x128xbf16>, vector<2x128xf32> -> vector<2x128xf32>
    %c0_11 = arith.constant 0 : index
    %c0_12 = arith.constant 0 : index
    %8 = vector.load %arg4[%c0_11, %c0_12] : memref<2x1xf32, #tpu.memory_space<vmem>>, vector<2x1xf32>
    %9 = vector.broadcast %8 : vector<2x1xf32> to vector<2x128xf32>
    %10 = arith.mulf %7, %9 : vector<2x128xf32>
    %11 = arith.truncf %10 : vector<2x128xf32> to vector<2x128xbf16>
    %cst_13 = arith.constant 0.000000e+00 : bf16
    %12 = vector.broadcast %cst_13 : bf16 to vector<2x128xbf16>
    %c0_14 = arith.constant 0 : index
    %c0_15 = arith.constant 0 : index
    %13 = vector.load %arg15[%c0_14, %c0_15] : memref<2x128xbf16, #tpu.memory_space<vmem>>, vector<2x128xbf16>
    tpu.vector_store %arg15[%c0_14, %c0_15], %12 {strides = array<i32>} : memref<2x128xbf16, #tpu.memory_space<vmem>>, vector<2x128xbf16>,
    %c0_16 = arith.constant 0 : index
    %c0_17 = arith.constant 0 : index
    %14 = vector.load %arg5[%c0_16, %c0_17] : memref<2x38xbf16, #tpu.memory_space<vmem>>, vector<2x38xbf16>
    %c0_18 = arith.constant 0 : index
    %c0_19 = arith.constant 0 : index
    %15 = vector.load %arg15[%c0_18, %c0_19] : memref<2x128xbf16, #tpu.memory_space<vmem>>, vector<2x38xbf16>
    tpu.vector_store %arg15[%c0_18, %c0_19], %14 {strides = array<i32>} : memref<2x128xbf16, #tpu.memory_space<vmem>>, vector<2x38xbf16>,
    %c0_20 = arith.constant 0 : index
    %c0_21 = arith.constant 0 : index
    %16 = vector.load %arg8[%c0_20, %c0_21] : memref<128x128xbf16, #tpu.memory_space<vmem>>, vector<128x128xbf16>
    %cst_22 = arith.constant dense<0.000000e+00> : vector<2x128xf32>
    %17 = tpu.matmul %11, %16, %cst_22 {dimension_numbers = #tpu.dot_dimension_numbers<[1], [0], [0], [1], [0, 0, 1, 1], [], []>} : vector<2x128xbf16>, vector<128x128xbf16>, vector<2x128xf32> -> vector<2x128xf32>
    %c0_23 = arith.constant 0 : index
    %c0_24 = arith.constant 0 : index
    %18 = vector.load %arg15[%c0_23, %c0_24] : memref<2x128xbf16, #tpu.memory_space<vmem>>, vector<2x128xbf16>
    %c0_25 = arith.constant 0 : index
    %c0_26 = arith.constant 0 : index
    %19 = vector.load %arg9[%c0_25, %c0_26] : memref<128x128xbf16, #tpu.memory_space<vmem>>, vector<128x128xbf16>
    %cst_27 = arith.constant dense<0.000000e+00> : vector<2x128xf32>
    %20 = tpu.matmul %18, %19, %cst_27 {dimension_numbers = #tpu.dot_dimension_numbers<[1], [0], [0], [1], [0, 0, 1, 1], [], []>} : vector<2x128xbf16>, vector<128x128xbf16>, vector<2x128xf32> -> vector<2x128xf32>
    %21 = arith.addf %17, %20 : vector<2x128xf32>
    %c0_28 = arith.constant 0 : index
    %c0_29 = arith.constant 0 : index
    %22 = vector.load %arg10[%c0_28, %c0_29] : memref<1x128xf32, #tpu.memory_space<vmem>>, vector<1x128xf32>
    %23 = vector.broadcast %22 : vector<1x128xf32> to vector<2x128xf32>
    %24 = arith.addf %21, %23 : vector<2x128xf32>
    %25 = arith.truncf %24 : vector<2x128xf32> to vector<2x128xbf16>
    %c0_30 = arith.constant 0 : index
    %c0_31 = arith.constant 0 : index
    %26 = vector.load %arg11[%c0_30, %c0_31] : memref<128x128xbf16, #tpu.memory_space<vmem>>, vector<128x128xbf16>
    %cst_32 = arith.constant dense<0.000000e+00> : vector<2x128xf32>
    %27 = tpu.matmul %25, %26, %cst_32 {dimension_numbers = #tpu.dot_dimension_numbers<[1], [0], [0], [1], [0, 0, 1, 1], [], []>} : vector<2x128xbf16>, vector<128x128xbf16>, vector<2x128xf32> -> vector<2x128xf32>
    %c0_33 = arith.constant 0 : index
    %c0_34 = arith.constant 0 : index
    %28 = vector.load %arg12[%c0_33, %c0_34] : memref<1x128xf32, #tpu.memory_space<vmem>>, vector<1x128xf32>
    %29 = vector.broadcast %28 : vector<1x128xf32> to vector<2x128xf32>
    %30 = arith.addf %27, %29 : vector<2x128xf32>
    %c0_35 = arith.constant 0 : index
    %c0_36 = arith.constant 0 : index
    %31 = vector.load %arg13[%c0_35, %c0_36] : memref<2x128xf32, #tpu.memory_space<vmem>>, vector<2x128xf32>
    tpu.vector_store %arg13[%c0_35, %c0_36], %30 {strides = array<i32>} : memref<2x128xf32, #tpu.memory_space<vmem>>, vector<2x128xf32>,
    return
  }
}

</mosaic_0001>

<bundles_post_ra>
// kernel: tpu_custom_call.1
= control target key start
LH: loop header
LB: loop body
LE: loop exit
PB: predicated region body
PF: predicated region fallthrough
CT: control target
= control target key end

     0   :  { %18 = vsyncpa [#allocation5], 0  ;;  %s1741_s0 = inlined_call_operand.vmem [shape: bf16[48,16], index: 0, kind: input, shape index: {}]   ;;  %s1742_s1 = inlined_call_operand.vmem [shape: bf16[16,8], index: 1, kind: input, shape index: {}]   ;;  %s1743_s2 = inlined_call_operand.vmem [shape: f32[48,1], index: 2, kind: input, shape index: {}]   ;;  %s1744_s3 = inlined_call_operand.vmem [shape: bf16[2,16], index: 3, kind: input, shape index: {}]   ;;  %s1745_s4 = inlined_call_operand.vmem [shape: f32[2,1], index: 4, kind: input, shape index: {}]   ;;  %s1746_s5 = inlined_call_operand.vmem [shape: bf16[2,38], index: 5, kind: input, shape index: {}]   ;;  %s1747_s6 = inlined_call_operand.hbm [shape: bf16[4,512,128], index: 6, kind: input, shape index: {}]   ;;  %s1748_s7 = inlined_call_operand.hbm [shape: f32[4,1,128], index: 7, kind: input, shape index: {}]   ;;  %s1749_s8 = inlined_call_operand.vmem [shape: bf16[128,128], index: 8, kind: input, shape index: {}]   ;;  %s1750_s9 = inlined_call_operand.vmem [shape: bf16[128,128], index: 9, kind: input, shape index: {}]   ;;  %s1751_s10 = inlined_call_operand.vmem [shape: f32[1,128], index: 10, kind: input, shape index: {}]   ;;  %s1752_s11 = inlined_call_operand.hbm [shape: bf16[128,128], index: 11, kind: input, shape index: {}]   ;;  %s1753_s12 = inlined_call_operand.vmem [shape: f32[1,128], index: 12, kind: input, shape index: {}]   ;;  %s1754_s13 = inlined_call_operand.hbm [shape: f32[2,128], index: 13, kind: output, shape index: {}]  }
   0x1   :  { %19 = vsyncpa [#allocation8], 0 }
   0x2   :  { %20 = vsyncpa [#allocation6], 0  ;;  %s1425_s25 = smov [#allocation7]   ;;  %s1323_s29 = scalar_lea.hbm %s1748_s7, 64 }
   0x3   :  { %s50_s26 = sshll.u32 %s1425_s25, 4  ;;  %p1324_p0 = scmp.ne.s32.totalorder %s1748_s7, %s1323_s29  ;;  %s51_s26 = int_to_ptr.vmem [resolvable:$true] %s50_s26 }
   0x4   :  { %p1327_p1 = scmp.lt.u32.totalorder %s1323_s29, %s1748_s7 }
   0x6   :  { %p1329_p2 = pnand %p1327_p1, %p1324_p0 }
   0x8   :  { %1332 = shalt.err (!%p1329_p2)
}
   0x9   :  { %s1333_s17 = scalar_lea.vmem %s51_s26, 64  ;;  %p1338_p4 = scmp.lt.s32.totalorder %s51_s26, %s51_s26 }
   0xa   :  { %p1334_p3 = scmp.ne.s32.totalorder %s51_s26, %s1333_s17  ;;  %p1339_p5 = scmp.lt.s32.totalorder %s1333_s17, %s1333_s17 }
   0xc   :  { %p1340_p6 = por %p1339_p5, %p1338_p4 }
   0xe   :  { %p1341_p7 = pnand %p1340_p6, %p1334_p3 }
  0x10   :  { %1344 = shalt.err (!%p1341_p7)
}
  0x11   :  { %s1426_s18 = smov 16   ;;  %s1427_s19 = smov 1  }
  0x12   :  { %56 = dma.hbm_to_vmem [thread:$0]  %s1748_s7, 64, %s51_s26, [#allocation8], %s1426_s18, %s1426_s18, %s1427_s19  }
  0x13   :  { %s1428_s22 = smov [#allocation4]   ;;  %s1345_s27 = scalar_lea.hbm %s1747_s6, 16384 }
  0x14   :  { %s38_s23 = sshll.u32 %s1428_s22, 4  ;;  %p1346_p8 = scmp.ne.s32.totalorder %s1747_s6, %s1345_s27  ;;  %s39_s23 = int_to_ptr.vmem [resolvable:$true] %s38_s23 }
  0x15   :  { %p1349_p9 = scmp.lt.u32.totalorder %s1345_s27, %s1747_s6 }
  0x17   :  { %p1351_p10 = pnand %p1349_p9, %p1346_p8 }
  0x19   :  { %1354 = shalt.err (!%p1351_p10)
}
  0x1a   :  { %s1355_s15 = scalar_lea.vmem %s39_s23, 16384  ;;  %p1360_p12 = scmp.lt.s32.totalorder %s39_s23, %s39_s23 }
  0x1b   :  { %p1356_p11 = scmp.ne.s32.totalorder %s39_s23, %s1355_s15  ;;  %p1361_p13 = scmp.lt.s32.totalorder %s1355_s15, %s1355_s15 }
  0x1d   :  { %p1362_p0 = por %p1361_p13, %p1360_p12 }
  0x1f   :  { %p1363_p1 = pnand %p1362_p0, %p1356_p11 }
  0x21   :  { %1366 = shalt.err (!%p1363_p1)
}
  0x22   :  { %s1429_s7 = smov 64   ;;  %s1430_s26 = smov 4  }
  0x23   :  { %44 = dma.hbm_to_vmem [thread:$0]  %s1747_s6, 16384, %s39_s23, [#allocation5], %s1429_s7, %s1429_s7, %s1430_s26  }
  0x24   :  { %s1431_s18 = smov [#allocation9]   ;;  %s1367_s22 = scalar_lea.hbm %s1752_s11, 1024 }
  0x25   :  { %s68_s19 = sshll.u32 %s1431_s18, 4  ;;  %p1368_p2 = scmp.ne.s32.totalorder %s1752_s11, %s1367_s22  ;;  %s69_s19 = int_to_ptr.vmem [resolvable:$true] %s68_s19 }
  0x26   :  { %p1371_p3 = scmp.lt.u32.totalorder %s1367_s22, %s1752_s11 }
  0x28   :  { %p1373_p4 = pnand %p1371_p3, %p1368_p2 }
  0x2a   :  { %1376 = shalt.err (!%p1373_p4)
}
  0x2b   :  { %s1377_s29 = scalar_lea.vmem %s69_s19, 1024  ;;  %p1382_p6 = scmp.lt.s32.totalorder %s69_s19, %s69_s19 }
  0x2c   :  { %p1378_p5 = scmp.ne.s32.totalorder %s69_s19, %s1377_s29  ;;  %p1383_p7 = scmp.lt.s32.totalorder %s1377_s29, %s1377_s29 }
  0x2e   :  { %p1384_p8 = por %p1383_p7, %p1382_p6 }
  0x30   :  { %p1385_p9 = pnand %p1384_p8, %p1378_p5 }
  0x32   :  { %1388 = shalt.err (!%p1385_p9)
}
  0x33   :  { %74 = dma.hbm_to_vmem [thread:$0]  %s1752_s11, 1024, %s69_s19, [#allocation8], %s1429_s7, %s1429_s7, %s1430_s26  }
  0x34   :  { %1415 = dma.done.wait [#allocation5], 16384  }
  0x35   :  { %1416 = vsyncadd [#allocation5], 4294950912 }
  0x36   :  { %1417 = dma.done.wait [#allocation8], 1088  }
  0x37   :  { %1418 = vsyncadd [#allocation8], 4294966208  ;;  %v1432_v0 = vmov 0   ;;  %vm99_vm0 = vcmask 64512   ;;  %v1260_v1 = vld [vmem:[%s1742_s1] sm:$0xff]   ;;  %s1549_s15 = smov 0  }
  0x38   :  { %87 = vst [vmem:[#allocation2] sm:$0xff] %v1432_v0 }
  0x39   :  { %100 = vst.msk [vmem:[#allocation2] sm:$0xff] %vm99_vm0, %v1260_v1 }
  0x3a LB: > { %v1433_v3 = vmov 0.0   ;;  %vm1434_vm1 = vmmov 0   ;;  %v1263_v4 = vld [vmem:[%s1741_s0] sm:$0xff]   ;;  %vm129_vm2 = vcmask 130048   ;;  %s1080_s18 = sshll.u32 %s1423_s15, 8  ;;  %v1435_v7 = vmov 0   ;;  %s1423_s15 = sphi %s1549_s15, %s106_s15  }
  0x3b   : > { %1158 = vmatprep.subr.bf16.mxu0 %v1433_v3  ;;  %1160 = vmatprep.mubr.msk.bf16.mxu0 %vm1434_vm1, %v1433_v3  ;;  %v196_v5 = vld [vmem:[%s1743_s2] sm:$0xff]  ;;  %v197_v8 = vld [vmem:[%s1743_s2 + $0x8] sm:$0xff]  ;;  %s1575_s24 = scalar_lea.vmem [#allocation4], %s1080_s18  ;;  %v198_v13 = vld [vmem:[%s1743_s2 + $0x10] sm:$0xff]  ;;  %s315_s11 = scalar_lea.vmem [#allocation7], %s1423_s15 }
  0x3c   : > { %v200_v6 = vld [vmem:[%s1743_s2 + $0x20] sm:$0xff]  ;;  %1261 = vset.pattern.permute.xlu0 %v1435_v7  ;;  %1262 = vset.pattern.permute.xlu1 %v1435_v7  ;;  %v201_v9 = vld [vmem:[%s1743_s2 + $0x28] sm:$0xff]  ;;  %v199_v15 = vld [vmem:[%s1743_s2 + $0x18] sm:$0xff]  ;;  %s106_s15 = sadd.s32 1, %s1423_s15  }
  0x3d   : > { %204 = vperm.xlu0 %1261, %v196_v5   ;;  %224 = vperm.xlu1 %1262, %v200_v6   ;;  %v1266_v10 = vld [vmem:[%s1575_s24 + $0x40] sm:$0xff]   ;;  %v1264_v11 = vld [vmem:[%s1741_s0 + $0x8] sm:$0xff]   ;;  %v1265_v16 = vld [vmem:[%s1741_s0 + $0x10] sm:$0xff]   ;;  %p103_p10 = scmp.ge.s32.totalorder %s106_s15, 4  }
  0x3e   : > { %v1267_v12 = vld [vmem:[%s1575_s24] sm:$0xff]   ;;  %1085 = vmatprep.subr.bf16.mxu1 %v1266_v10  ;;  %v1268_v14 = vld [vmem:[%s1575_s24 + $0x48] sm:$0xff]   ;;  %v1272_v20 = vld [vmem:[%s1575_s24 + $0x50] sm:$0xff]   ;;  %653 = vst [vmem:[#allocation3] sm:$0x1] (%p103_p10), %v1432_v0  ;;  %vm1437_vm3 = vmmov (%p103_p10), 0  }
  0x3f   : > { %1086 = vmatpush3.bf16.msra.mxu1 %v1267_v12  ;;  %v1269_v17 = vld [vmem:[%s1575_s24 + $0x8] sm:$0xff]   ;;  %v1270_v18 = vld [vmem:[%s1575_s24 + $0xc0] sm:$0xff]   ;;  %v1273_v21 = vld [vmem:[%s1575_s24 + $0x10] sm:$0xff]   ;;  %vm655_vm4 = vcmask (%p103_p10), 303104   ;;  %s1438_s22 = smov (%p103_p10), [#allocation10]  }
  0x40   : > { %v1554_v2 = vld [vmem:[#allocation2] sm:$0xff]  ;;  %1087 = vmatprep.subr.bf16.mxu1 %v1268_v14  ;;  %v1274_v22 = vld [vmem:[%s1575_s24 + $0xc8] sm:$0xff]   ;;  %v1276_v24 = vld [vmem:[%s1575_s24 + $0x58] sm:$0xff]  }
  0x41   : > { %1159 = vmatpush3.bf16.msra.mxu0 %v1554_v2  ;;  %209 = vperm.xlu0 %1261, %v197_v8   ;;  %v1271_v19 = vld [vmem:[%s1575_s24 + $0x80] sm:$0xff]   ;;  %v1275_v23 = vld [vmem:[%s1575_s24 + $0x88] sm:$0xff]   ;;  %v1277_v25 = vld [vmem:[%s1575_s24 + $0x18] sm:$0xff]  }
  0x42   : > { %229 = vperm.xlu1 %1262, %v201_v9   ;;  %1107 = vmatprep.subr.bf16.mxu0 %v1270_v18  ;;  %v1278_v26 = vld [vmem:[%s1575_s24 + $0xd0] sm:$0xff]   ;;  %v1280_v28 = vld [vmem:[%s1575_s24 + $0x60] sm:$0xff]   ;;  %v1282_v30 = vld [vmem:[%s1575_s24 + $0xd8] sm:$0xff]  }
  0x43   : > { %1088 = vmatpush3.bf16.msra.mxu1 %v1269_v17  ;;  %v1279_v27 = vld [vmem:[%s1575_s24 + $0x90] sm:$0xff]   ;;  %v1281_v29 = vld [vmem:[%s1575_s24 + $0x20] sm:$0xff]   ;;  %v1283_v31 = vld [vmem:[%s1575_s24 + $0x98] sm:$0xff]  }
  0x44   : > { %1161 = vmatmul.mubr.msk.bf16.vlgmr.msra.gmra.mrb[0].mxu0 %vm129_vm2, %v1263_v4  ;;  %1089 = vmatprep.subr.bf16.mxu1 %v1272_v20  ;;  %v1284_v32 = vld [vmem:[%s1575_s24 + $0x68] sm:$0xff]   ;;  %v1286_v34 = vld [vmem:[%s1575_s24 + $0xe0] sm:$0xff]   ;;  %v1288_v36 = vld [vmem:[%s1575_s24 + $0x70] sm:$0xff]  }
  0x45   : > { %1164 = vmatprep.mubr.msk.bf16.mxu0 %vm1434_vm1, %v1433_v3  ;;  %214 = vperm.xlu0 %1261, %v198_v13   ;;  %v1285_v33 = vld [vmem:[%s1575_s24 + $0x28] sm:$0xff]   ;;  %v1287_v35 = vld [vmem:[%s1575_s24 + $0xa0] sm:$0xff]   ;;  %v1289_v37 = vld [vmem:[%s1575_s24 + $0x30] sm:$0xff]  }
  0x46   : > { %219 = vperm.xlu1 %1262, %v199_v15   ;;  %1108 = vmatpush3.bf16.msra.mxu0 %v1271_v19  ;;  %v1290_v38 = vld [vmem:[%s1575_s24 + $0xe8] sm:$0xff]   ;;  %v1292_v40 = vld [vmem:[%s1575_s24 + $0x78] sm:$0xff]   ;;  %v1294_v42 = vld [vmem:[%s1575_s24 + $0xf0] sm:$0xff]  }
  0x47   : > { %1090 = vmatpush3.bf16.msra.mxu1 %v1273_v21  ;;  %1109 = vmatprep.subr.bf16.mxu0 %v1274_v22  ;;  %v1291_v39 = vld [vmem:[%s1575_s24 + $0xa8] sm:$0xff]   ;;  %v1293_v41 = vld [vmem:[%s1575_s24 + $0x38] sm:$0xff]   ;;  %v1295_v43 = vld [vmem:[%s1575_s24 + $0xb0] sm:$0xff]  }
  0x48   : > { %1091 = vmatprep.subr.bf16.mxu1 %v1276_v24  ;;  %v1296_v44 = vld [vmem:[%s1575_s24 + $0xf8] sm:$0xff]  }
  0x49   : > { %v1297_v45 = vld [vmem:[%s1575_s24 + $0xb8] sm:$0xff]   ;;  %1298 = vset.pattern.permute.xlu0 (%p103_p10), %v1432_v0  ;;  %v1301_v0 = vld [vmem:[%s1750_s9 + $0x8] sm:$0xff] (%p103_p10)   ;;  %s993_s24 = sshll.u32 (%p103_p10), %s1438_s22, 4  ;;  %s994_s24 = int_to_ptr.vmem [resolvable:$true] %s993_s24 }
  0x4a   : > { %1110 = vmatpush3.bf16.msra.mxu0 %v1275_v23  ;;  %p1394_p12 = scmp.lt.s32.totalorder (%p103_p10), %s994_s24, %s994_s24 }
  0x4b   : > { %1092 = vmatpush3.bf16.msra.mxu1 %v1277_v25  ;;  %1111 = vmatprep.subr.bf16.mxu0 %v1278_v26 }
  0x4c   : > { %1165 = vmatmul.mubr.msk.bf16.gmra.mrb[4].mxu0 %vm129_vm2, %v1264_v11  ;;  %1093 = vmatprep.subr.bf16.mxu1 %v1280_v28 }
  0x4d   : > { %1168 = vmatprep.mubr.msk.bf16.mxu0 %vm1434_vm1, %v1433_v3 }
  0x4e   : > { %1112 = vmatpush3.bf16.msra.mxu0 %v1279_v27 }
  0x4f   : > { %1094 = vmatpush3.bf16.msra.mxu1 %v1281_v29  ;;  %1113 = vmatprep.subr.bf16.mxu0 %v1282_v30  ;;  %v599_v29 = vld [vmem:[%s1744_s3] sm:$0x1] (%p103_p10) }
  0x50   : > { %1095 = vmatprep.subr.bf16.mxu1 %v1284_v32  ;;  %v1299_v30 = vld [vmem:[%s1750_s9] sm:$0xff] (%p103_p10)  }
  0x51   :  { %v645_v32 = vld [vmem:[%s1745_s4] sm:$0x3] (%p103_p10) }
  0x52   : > { %1114 = vmatpush3.bf16.msra.mxu0 %v1283_v31  ;;  %v1436_v31 = vmov (%p103_p10), 0.0   ;;  %648 = vperm.xlu0 (%p103_p10), %1298, %v645_v32  }
  0x53   : > { %1096 = vmatpush3.bf16.msra.mxu1 %v1285_v33  ;;  %1115 = vmatprep.subr.bf16.mxu0 %v1286_v34  ;;  %v1300_v33 = vld [vmem:[%s1749_s8] sm:$0xff] (%p103_p10)   ;;  %v1302_v34 = vld [vmem:[%s1749_s8 + $0x8] sm:$0xff] (%p103_p10)  }
  0x54   : > { %1169 = vmatmul.mubr.msk.bf16.gmra.mrb[8].mxu0 %vm129_vm2, %v1265_v16  ;;  %1097 = vmatprep.subr.bf16.mxu1 %v1288_v36  ;;  %v1020_v16 = vld [vmem:[%s315_s11] ss:$0 sm:$0xff]  ;;  %v1304_v36 = vld [vmem:[%s1749_s8 + $0x10] sm:$0xff] (%p103_p10)  }
  0x56   : > { %1116 = vmatpush3.bf16.msra.mxu0 %v1287_v35  ;;  %v1303_v35 = vld [vmem:[%s1750_s9 + $0x10] sm:$0xff] (%p103_p10)  }
  0x57   : > { %1098 = vmatpush3.bf16.msra.mxu1 %v1289_v37  ;;  %1117 = vmatprep.subr.bf16.mxu0 %v1290_v38  ;;  %v1305_v37 = vld [vmem:[%s1750_s9 + $0x18] sm:$0xff] (%p103_p10)  }
  0x58   : > { %1099 = vmatprep.subr.bf16.mxu1 %v1292_v40  ;;  %v1306_v38 = vld [vmem:[%s1749_s8 + $0x18] sm:$0xff] (%p103_p10)   ;;  %v1308_v40 = vld [vmem:[%s1749_s8 + $0x20] sm:$0xff] (%p103_p10)  }
  0x5a   : > { %1118 = vmatpush3.bf16.msra.mxu0 %v1291_v39  ;;  %v1307_v39 = vld [vmem:[%s1750_s9 + $0x20] sm:$0xff] (%p103_p10)  }
  0x5b   : > { %1100 = vmatpush3.bf16.msra.mxu1 %v1293_v41  ;;  %1119 = vmatprep.subr.bf16.mxu0 %v1294_v42  ;;  %v1309_v41 = vld [vmem:[%s1750_s9 + $0x28] sm:$0xff] (%p103_p10)  }
  0x5c   :  { %1178 = vmatprep.subr.bf16.mxu1 (%p103_p10), %v1436_v31  ;;  %v1310_v42 = vld [vmem:[%s1749_s8 + $0x28] sm:$0xff] (%p103_p10)  }
  0x5e   : > { %1120 = vmatpush3.bf16.msra.mxu0 %v1295_v43  ;;  %v1311_v43 = vld [vmem:[%s1750_s9 + $0x30] sm:$0xff] (%p103_p10)  }
  0x5f   : > { %1121 = vmatprep.subr.bf16.mxu0 %v1296_v44  ;;  %v1312_v44 = vld [vmem:[%s1749_s8 + $0x30] sm:$0xff] (%p103_p10)  }
  0x62   : > { %1122 = vmatpush3.bf16.msra.mxu0 %v1297_v45  ;;  %v1313_v45 = vld [vmem:[%s1750_s9 + $0x38] sm:$0xff] (%p103_p10)  }
  0x63   :  { %1172 = vmatprep.subr.bf16.mxu0 (%p103_p10), %v1436_v31 }
  0xbc   : > { %v205_v46 = vpop.permute.xlu0 %204  ;;  %v225_v47 = vpop.permute.xlu1 %224 }
  0xc0   : > { %v210_v49 = vpop.permute.xlu0 %209 }
  0xc1   : > { %v230_v52 = vpop.permute.xlu1 %229 }
  0xc4   : > { %v215_v57 = vpop.permute.xlu0 %214 }
  0xc5   : > { %v220_v59 = vpop.permute.xlu1 %219 }
 0x117   : > { %v173_v48 = vpop.f32.mrb[0].mxu0 }
 0x118   : > { %v1162_v50 = vpop.f32.mrb[1].mxu0  ;;  %v232_v53 = vmul.f32 %v205_v46, %v173_v48  ;;  %v654_v46 = vld [vmem:[%s1746_s5] sm:$0x1] (%p103_p10) }
 0x119   : > { %v176_v51 = vpop.f32.mrb[2].mxu0  ;;  %656 = vst.msk [vmem:[#allocation3] sm:$0x1] (%p103_p10), %vm655_vm4, %v654_v46  ;;  %v1316_v50 = vld [vmem:[#allocation9 + $0x8] sm:$0xff] (%p103_p10)  }
 0x11a   : > { %v233_v54 = vmul.f32 %v210_v49, %v176_v51  ;;  %v1163_v55 = vpop.f32.mrb[3].mxu0  ;;  %v1315_v49 = vld [vmem:[#allocation9] sm:$0xff] (%p103_p10)   ;;  %v1317_v51 = vld [vmem:[#allocation9 + $0x10] sm:$0xff] (%p103_p10)  }
 0x11b   :  { %v649_v55 = vpop.permute.xlu0 (%p103_p10), %648 }
 0x11c   : > { %v238_v56 = vpack.c.bf16 %v233_v54, %v232_v53  ;;  %v1319_v53 = vld [vmem:[#allocation9 + $0x20] sm:$0xff] (%p103_p10)   ;;  %v1320_v54 = vld [vmem:[#allocation9 + $0x28] sm:$0xff] (%p103_p10)  }
 0x11e   : > { %547 = vmatprep.mubr.bf16.mxu1 %v238_v56 }
 0x11f   : > { %v181_v58 = vpop.f32.mrb[4].mxu0  ;;  %548 = vmatmul.mubr.bf16.vlgmr.msra.gmra.mrb[0].mxu1 %v1554_v2 }
 0x120   : > { %v1166_v60 = vpop.f32.mrb[5].mxu0  ;;  %v234_v62 = vmul.f32 %v215_v57, %v181_v58  ;;  %1179 = vmatpush3.bf16.msra.mxu1 (%p103_p10), %v1299_v30  ;;  %1194 = vmatprep.mubr.msk.bf16.mxu1 (%p103_p10), %vm1437_vm3, %v1436_v31  ;;  %v673_v48 = vld [vmem:[#allocation3] sm:$0x1] (%p103_p10) }
 0x121   : > { %v184_v61 = vpop.f32.mrb[6].mxu0  ;;  %1180 = vmatprep.subr.bf16.mxu1 (%p103_p10), %v1436_v31 }
 0x122   : > { %v235_v63 = vmul.f32 %v220_v59, %v184_v61  ;;  %v1167_v1 = vpop.f32.mrb[7].mxu0 }
 0x123   :  { %v1321_v1 = vld [vmem:[#allocation9 + $0x30] sm:$0xff] (%p103_p10)  }
 0x124   : > { %v239_v3 = vpack.c.bf16 %v235_v63, %v234_v62  ;;  %1181 = vmatpush3.bf16.msra.mxu1 (%p103_p10), %v1301_v0 }
 0x125   :  { %1182 = vmatprep.subr.bf16.mxu1 (%p103_p10), %v1436_v31 }
 0x127   : > { %v189_v4 = vpop.f32.mrb[8].mxu0 }
 0x128   : > { %v1170_v5 = vpop.f32.mrb[9].mxu0  ;;  %v236_v7 = vmul.f32 %v225_v47, %v189_v4  ;;  %1183 = vmatpush3.bf16.msra.mxu1 (%p103_p10), %v1303_v35  ;;  %v1314_v47 = vld [vmem:[%s1749_s8 + $0x38] sm:$0xff] (%p103_p10)  }
 0x129   : > { %v192_v6 = vpop.f32.mrb[10].mxu0  ;;  %1184 = vmatprep.subr.bf16.mxu1 (%p103_p10), %v1436_v31  ;;  %v1322_v5 = vld [vmem:[#allocation9 + $0x38] sm:$0xff] (%p103_p10)  }
 0x12a   : > { %v237_v8 = vmul.f32 %v230_v52, %v192_v6  ;;  %v1171_v9 = vpop.f32.mrb[11].mxu0  ;;  %v1318_v52 = vld [vmem:[#allocation9 + $0x18] sm:$0xff] (%p103_p10)  }
 0x12c   : > { %v240_v10 = vpack.c.bf16 %v237_v8, %v236_v7  ;;  %1185 = vmatpush3.bf16.msra.mxu1 (%p103_p10), %v1305_v37  ;;  %v1070_v7 = vld [vmem:[%s1751_s10] ss:$0 sm:$0xff] (%p103_p10)  ;;  %s1389_s10 = scalar_lea.vmem (%p103_p10), %s994_s24, 32 }
 0x12d   :  { %1186 = vmatprep.subr.bf16.mxu1 (%p103_p10), %v1436_v31  ;;  %p1390_p11 = scmp.ne.s32.totalorder (%p103_p10), %s994_s24, %s1389_s10  ;;  %p1395_p13 = scmp.lt.s32.totalorder (%p103_p10), %s1389_s10, %s1389_s10 }
 0x12e   : > { %588 = vmatprep.mubr.bf16.mxu0 %v240_v10 }
 0x12f   : > { %589 = vmatmul.mubr.bf16.vlgmr.msra.gmra.mrb[12].mxu0 %v239_v3  ;;  %p1396_p0 = por (%p103_p10), %p1395_p13, %p1394_p12 }
 0x130   :  { %1174 = vmatprep.mubr.msk.bf16.mxu0 (%p103_p10), %vm1437_vm3, %v1436_v31  ;;  %1187 = vmatpush3.bf16.msra.mxu1 (%p103_p10), %v1307_v39 }
 0x131   :  { %1188 = vmatprep.subr.bf16.mxu1 (%p103_p10), %v1436_v31  ;;  %p1397_p1 = pnand (%p103_p10), %p1396_p0, %p1390_p11 }
 0x134   :  { %1189 = vmatpush3.bf16.msra.mxu1 (%p103_p10), %v1309_v41 }
 0x135   :  { %1190 = vmatprep.subr.bf16.mxu1 (%p103_p10), %v1436_v31 }
 0x138   :  { %1191 = vmatpush3.bf16.msra.mxu1 (%p103_p10), %v1311_v43 }
 0x139   :  { %1192 = vmatprep.subr.bf16.mxu1 (%p103_p10), %v1436_v31 }
 0x13c   :  { %1193 = vmatpush3.bf16.msra.mxu1 (%p103_p10), %v1313_v45 }
 0x13d   :  { %1218 = vmatprep.subr.bf16.mxu1 (%p103_p10), %v1436_v31 }
 0x1f2   : > { %v1101_v11 = vpop.f32.mrb[0].mxu1 }
 0x1f3   : > { %v1102_v12 = vpop.f32.mrb[1].mxu1 }
 0x1f4   : > { %v1103_v13 = vadd.f32 %v1102_v12, %v1101_v11  ;;  %v1104_v2 = vpop.f32.mrb[2].mxu1 }
 0x1f5   : > { %v1105_v14 = vpop.f32.mrb[3].mxu1  ;;  %1195 = vmatmul.mubr.bf16.vlgmr.msra.gmra.mrb[0].mxu1 (%p103_p10), %v673_v48 }
 0x1f6   : > { %v1106_v15 = vadd.f32 %v1105_v14, %v1104_v2  ;;  %v550_v17 = vadd.f32 %v1103_v13, %v1020_v16  ;;  %1234 = vmatprep.mubr.msk.bf16.mxu1 (%p103_p10), %vm1437_vm3, %v1436_v31  ;;  %1219 = vmatpush3.bf16.msra.mxu1 (%p103_p10), %v1315_v49  ;;  %v1071_v2 = vld [vmem:[%s1753_s12] ss:$0 sm:$0xff] (%p103_p10) }
 0x1f7   :  { %1220 = vmatprep.subr.bf16.mxu1 (%p103_p10), %v1436_v31 }
 0x1f8   : > { %v553_v23 = vadd.f32 %v1106_v15, %v1020_v16 }
 0x1fa   :  { %1221 = vmatpush3.bf16.msra.mxu1 (%p103_p10), %v1316_v50 }
 0x1fb   :  { %1222 = vmatprep.subr.bf16.mxu1 (%p103_p10), %v1436_v31 }
 0x1fe   :  { %1223 = vmatpush3.bf16.msra.mxu1 (%p103_p10), %v1317_v51 }
 0x1ff   :  { %1224 = vmatprep.subr.bf16.mxu1 (%p103_p10), %v1436_v31 }
 0x202   : > { %v1123_v18 = vpop.f32.mrb[12].mxu0  ;;  %1225 = vmatpush3.bf16.msra.mxu1 (%p103_p10), %v1318_v52 }
 0x203   : > { %v1124_v19 = vpop.f32.mrb[13].mxu0  ;;  %1226 = vmatprep.subr.bf16.mxu1 (%p103_p10), %v1436_v31 }
 0x204   : > { %v1125_v20 = vadd.f32 %v1124_v19, %v1123_v18  ;;  %v1126_v21 = vpop.f32.mrb[14].mxu0 }
 0x205   : > { %v1127_v22 = vpop.f32.mrb[15].mxu0 }
 0x206   : > { %v591_v24 = vadd.f32 %v1125_v20, %v550_v17  ;;  %v1128_v25 = vadd.f32 %v1127_v22, %v1126_v21  ;;  %105 = sbr.rel (!%p103_p10) target bundleno = 58 (0x3a), region = 93  ;;  %1227 = vmatpush3.bf16.msra.mxu1 (%p103_p10), %v1319_v53 }
 0x207   :  { %1228 = vmatprep.subr.bf16.mxu1 (%p103_p10), %v1436_v31 }
 0x208   : > { %v594_v26 = vadd.f32 %v1128_v25, %v553_v23 }
 0x20a   : > { %v597_v27 = vpack.c.bf16 %v594_v26, %v591_v24  ;;  %1229 = vmatpush3.bf16.msra.mxu1 (%p103_p10), %v1320_v54 }
 0x20b   :  { %1230 = vmatprep.subr.bf16.mxu1 (%p103_p10), %v1436_v31 }
 0x20c   : > { %598 = vst [vmem:[#allocation2] sm:$0xff] %v597_v27 }
 0x20e   :  { %1231 = vmatpush3.bf16.msra.mxu1 %v1321_v1 }
 0x20f   :  { %1232 = vmatprep.subr.bf16.mxu1 %v1436_v31 }
 0x212   :  { %1233 = vmatpush3.bf16.msra.mxu1 %v1322_v5 }
 0x213   :  { %v600_v28 = vld [vmem:[#allocation2] sm:$0xff] }
 0x214   :  { %1173 = vmatpush3.bf16.msra.mxu0 %v600_v28 }
 0x215   :  { %1198 = vmatprep.subr.bf16.mxu0 %v1436_v31 }
 0x217   :  { %1175 = vmatmul.mubr.msk.bf16.vlgmr.msra.gmra.mrb[0].mxu0 %vm129_vm2, %v599_v29 }
 0x218   :  { %1199 = vmatpush3.bf16.msra.mxu0 %v1300_v33  ;;  %1214 = vmatprep.mubr.msk.bf16.mxu0 %vm1437_vm3, %v1436_v31 }
 0x219   :  { %1200 = vmatprep.subr.bf16.mxu0 %v1436_v31 }
 0x21c   :  { %1201 = vmatpush3.bf16.msra.mxu0 %v1302_v34 }
 0x21d   :  { %1202 = vmatprep.subr.bf16.mxu0 %v1436_v31 }
 0x220   :  { %1203 = vmatpush3.bf16.msra.mxu0 %v1304_v36 }
 0x221   :  { %1204 = vmatprep.subr.bf16.mxu0 %v1436_v31 }
 0x224   :  { %1205 = vmatpush3.bf16.msra.mxu0 %v1306_v38 }
 0x225   :  { %1206 = vmatprep.subr.bf16.mxu0 %v1436_v31 }
 0x228   :  { %1207 = vmatpush3.bf16.msra.mxu0 %v1308_v40 }
 0x229   :  { %1208 = vmatprep.subr.bf16.mxu0 %v1436_v31 }
 0x22c   :  { %1209 = vmatpush3.bf16.msra.mxu0 %v1310_v42 }
 0x22d   :  { %1210 = vmatprep.subr.bf16.mxu0 %v1436_v31 }
 0x230   :  { %1211 = vmatpush3.bf16.msra.mxu0 %v1312_v44 }
 0x231   :  { %1212 = vmatprep.subr.bf16.mxu0 %v1436_v31 }
 0x234   :  { %1213 = vmatpush3.bf16.msra.mxu0 %v1314_v47 }
 0x2c8   :  { %v772_v62 = vpop.f32.mrb[0].mxu1 }
 0x2c9   :  { %v1196_v63 = vpop.f32.mrb[1].mxu1 }
 0x2ca   :  { %v775_v3 = vpop.f32.mrb[2].mxu1 }
 0x2cb   :  { %v1197_v4 = vpop.f32.mrb[3].mxu1 }
 0x2ea   :  { %v639_v56 = vpop.f32.mrb[0].mxu0 }
 0x2eb   :  { %v651_v57 = vmul.f32 %v649_v55, %v639_v56  ;;  %v1176_v58 = vpop.f32.mrb[1].mxu0 }
 0x2ec   :  { %v642_v59 = vpop.f32.mrb[2].mxu0 }
 0x2ed   :  { %v652_v60 = vpack.c.bf16 %v651_v57, %v651_v57  ;;  %v1177_v61 = vpop.f32.mrb[3].mxu0 }
 0x2ef   :  { %1215 = vmatmul.mubr.bf16.vlgmr.msra.gmra.mrb[4].mxu0 %v652_v60 }
 0x3c2   :  { %v860_v6 = vpop.f32.mrb[4].mxu0 }
 0x3c3   :  { %v861_v8 = vadd.f32 %v860_v6, %v772_v62  ;;  %v1216_v9 = vpop.f32.mrb[5].mxu0 }
 0x3c4   :  { %v863_v10 = vpop.f32.mrb[6].mxu0 }
 0x3c5   :  { %v873_v11 = vadd.f32 %v1070_v7, %v861_v8  ;;  %v1217_v12 = vpop.f32.mrb[7].mxu0 }
 0x3c7   :  { %v874_v13 = vpack.c.bf16 %v873_v11, %v873_v11 }
 0x3c9   :  { %1235 = vmatmul.mubr.bf16.vlgmr.msra.gmra.mrb[4].mxu1 %v874_v13 }
 0x49c   :  { %v980_v14 = vpop.f32.mrb[4].mxu1 }
 0x49d   :  { %v981_v15 = vadd.f32 %v1071_v2, %v980_v14  ;;  %v1236_v16 = vpop.f32.mrb[5].mxu1 }
 0x49e   :  { %v983_v17 = vpop.f32.mrb[6].mxu1 }
 0x49f   :  { %986 = vst [vmem:[#allocation10] sm:$0x3] %v981_v15  ;;  %v1237_v18 = vpop.f32.mrb[7].mxu1 }
 0x4a0   :  { %1400 = shalt.err (!%p1397_p1)
}
 0x4a1   :  { %s1401_s12 = scalar_lea.hbm %s1754_s13, 32 }
 0x4a2   :  { %p1402_p2 = scmp.ne.s32.totalorder %s1754_s13, %s1401_s12  ;;  %p1405_p3 = scmp.lt.u32.totalorder %s1401_s12, %s1754_s13 }
 0x4a4   :  { %p1407_p4 = pnand %p1405_p3, %p1402_p2 }
 0x4a6   :  { %1410 = shalt.err (!%p1407_p4)
}
 0x4a7   :  { %996 = dma.vmem_to_hbm [thread:$0]  %s994_s24, 32, %s1754_s13, [#allocation6]  }
 0x4a8   :  { %1419 = dma.done.wait [#allocation6], 32  }
 0x4a9   :  { %1420 = vsyncadd [#allocation6], 4294967264 }
 0x4aa   :  { %1000 = vsyncpa [#allocation5], 1 }
 0x4ab   :  { %1001 = vsyncpa [#allocation8], 1 }
 0x4ac   :  { %1002 = vsyncpa [#allocation6], 1 }

</bundles_post_ra>
